<compile_context>
chip_gen: v7x
topology: tpu7x:2x2x1
jax: 0.10.0
libtpu: 0.0.40
codegen_flags: <defaults>
</compile_context>

<pallas_src>
import functools

import jax
import jax.numpy as jnp
from jax.experimental import pallas as pl
from jax.experimental.pallas import tpu as pltpu

_LANE = 128
_SUBLANE = 8


def _round_up(x, m):
    return ((x + m - 1) // m) * m


def _make_mlp_kernel(num_layers, relu_flags, enc_layer_idx):
    """Fused MLP kernel: chain of (bf16 matmul -> f32 accumulate -> +bias [-> relu]).

    Ref order: x, w_0..w_{L-1}, b_0..b_{L-1}, enc_out, rec_out.
    All feature dims are pre-padded to multiples of 128 by the wrapper.
    """

    def kernel(*refs):
        x_ref = refs[0]
        w_refs = refs[1:1 + num_layers]
        b_refs = refs[1 + num_layers:1 + 2 * num_layers]
        enc_ref = refs[1 + 2 * num_layers]
        rec_ref = refs[2 + 2 * num_layers]

        h = x_ref[...]                                   # (TB, in_p) bf16
        for i in range(num_layers):
            # bf16 x bf16 -> f32 accumulate on the MXU.
            acc = jnp.dot(h.astype(jnp.bfloat16), w_refs[i][...],
                          preferred_element_type=jnp.float32)
            acc = acc + b_refs[i][...]                   # (1, out_p) f32, broadcasts
            if relu_flags[i]:
                acc = jnp.maximum(acc, 0.0)
            if i == enc_layer_idx:
                enc_ref[...] = acc.astype(enc_ref.dtype)
            h = acc
        rec_ref[...] = h.astype(rec_ref.dtype)

    return kernel


def init_autoencoder_params(key, input_dim, hidden_dims):
    """PyTorch-style uniform(-1/sqrt(fan_in), 1/sqrt(fan_in)) init.

    Returns (weights, biases, relu_flags, enc_layer_idx, num_layers).
    Weights are stored as (in_features, out_features), i.e. already transposed
    relative to nn.Linear so the kernel computes h @ W + b.
    """
    enc_dims = [input_dim] + list(hidden_dims)
    dec_dims = [hidden_dims[-1]] + list(reversed(hidden_dims[:-1])) + [input_dim]

    layer_dims = list(zip(enc_dims[:-1], enc_dims[1:])) + \
                 list(zip(dec_dims[:-1], dec_dims[1:]))

    num_enc = len(hidden_dims)
    num_dec = len(dec_dims) - 1
    num_layers = num_enc + num_dec

    # ReLU after every encoder layer except the latent layer, and after every
    # decoder layer except the final reconstruction layer.
    relu_flags = [i < num_enc - 1 for i in range(num_enc)] + \
                 [i < num_dec - 1 for i in range(num_dec)]

    weights, biases = [], []
    for li, (fan_in, fan_out) in enumerate(layer_dims):
        kw, kb = jax.random.split(jax.random.fold_in(key, li))
        bound = 1.0 / (fan_in ** 0.5)
        weights.append(jax.random.uniform(kw, (fan_in, fan_out), jnp.float32,
                                          -bound, bound))
        biases.append(jax.random.uniform(kb, (1, fan_out), jnp.float32,
                                         -bound, bound))

    enc_layer_idx = num_enc - 1
    return weights, biases, tuple(relu_flags), enc_layer_idx, num_layers


@functools.partial(jax.jit, static_argnames=("relu_flags", "enc_layer_idx"))
def features_autoencoder_forward(x, weights, biases, relu_flags, enc_layer_idx):
    num_layers = len(weights)
    batch, in_dim = x.shape
    latent_dim = weights[enc_layer_idx].shape[1]
    out_dim = weights[-1].shape[1]

    # ---- Pad: batch to a sublane-aligned tile, feature dims to 128 lanes. ----
    tb = min(128, _round_up(max(batch, 1), _SUBLANE))
    batch_p = _round_up(batch, tb)
    in_p = _round_up(in_dim, _LANE)

    x_p = jnp.zeros((batch_p, in_p), jnp.bfloat16).at[:batch, :in_dim].set(
        x.astype(jnp.bfloat16))

    weights_p, biases_p = [], []
    for w, b in zip(weights, biases):
        fi, fo = w.shape
        fi_p, fo_p = _round_up(fi, _LANE), _round_up(fo, _LANE)
        weights_p.append(jnp.zeros((fi_p, fo_p), jnp.bfloat16)
                         .at[:fi, :fo].set(w.astype(jnp.bfloat16)))
        biases_p.append(jnp.zeros((1, fo_p), jnp.float32)
                        .at[:, :fo].set(b.astype(jnp.float32)))

    latent_p = weights_p[enc_layer_idx].shape[1]
    out_p = weights_p[-1].shape[1]

    grid = (batch_p // tb,)

    x_spec = pl.BlockSpec((tb, in_p), lambda i: (i, 0))
    w_specs = [pl.BlockSpec(w.shape, lambda i: (0, 0)) for w in weights_p]
    b_specs = [pl.BlockSpec(b.shape, lambda i: (0, 0)) for b in biases_p]
    enc_spec = pl.BlockSpec((tb, latent_p), lambda i: (i, 0))
    rec_spec = pl.BlockSpec((tb, out_p), lambda i: (i, 0))

    # ---- Cost estimate so XLA schedules sensibly around the custom call. ----
    flops = 2 * batch_p * sum(w.shape[0] * w.shape[1] for w in weights_p)
    bytes_accessed = (
        x_p.size * x_p.dtype.itemsize
        + sum(w.size * w.dtype.itemsize for w in weights_p)
        + sum(b.size * b.dtype.itemsize for b in biases_p)
        + batch_p * latent_p * 4 + batch_p * out_p * 4)
    cost = pl.CostEstimate(flops=flops, transcendentals=0,
                           bytes_accessed=bytes_accessed)

    # ---- VMEM budget from actual buffer sizes (v7x has only 64 MiB / TC). ----
    max_dim_p = max(w.shape[1] for w in weights_p)
    param_bytes = (sum(w.size * w.dtype.itemsize for w in weights_p)
                   + sum(b.size * b.dtype.itemsize for b in biases_p))
    act_bytes = 2 * (tb * in_p * 2 + tb * latent_p * 4 + tb * out_p * 4)
    scratch_bytes = 4 * tb * max_dim_p * 4      # headroom for spilled intermediates
    vmem_limit = int(min(max(2 * param_bytes + act_bytes + scratch_bytes, 32 << 20),
                         48 << 20))

    kernel = _make_mlp_kernel(num_layers, tuple(relu_flags), enc_layer_idx)

    encoding_p, reconstruction_p = pl.pallas_call(
        kernel,
        out_shape=(
            jax.ShapeDtypeStruct((batch_p, latent_p), jnp.float32),
            jax.ShapeDtypeStruct((batch_p, out_p), jnp.float32),
        ),
        grid=grid,
        in_specs=[x_spec] + w_specs + b_specs,
        out_specs=(enc_spec, rec_spec),
        compiler_params=pltpu.CompilerParams(
            dimension_semantics=("parallel",),   # megacore split on v7x, no-op elsewhere
            vmem_limit_bytes=vmem_limit),
        cost_estimate=cost,
    )(x_p, *weights_p, *biases_p)

    encoding = encoding_p[:batch, :latent_dim]
    reconstruction = reconstruction_p[:batch, :out_dim]
    return encoding, reconstruction


def reference_forward(x, weights, biases, relu_flags, enc_layer_idx):
    """Pure-JAX reference mirroring the kernel's bf16-matmul / f32-accumulate numerics."""
    h = x.astype(jnp.bfloat16).astype(jnp.float32)
    enc = None
    for i, (w, b) in enumerate(zip(weights, biases)):
        h = jnp.dot(h.astype(jnp.bfloat16), w.astype(jnp.bfloat16),
                    preferred_element_type=jnp.float32) + b
        if relu_flags[i]:
            h = jnp.maximum(h, 0.0)
        if i == enc_layer_idx:
            enc = h
    return enc, h


if __name__ == "__main__":
    # Small shapes consistent with the module: batch=8, 64-dim features,
    # hidden_dims=[32, 32, 64, 16] (mirrors the [500, 500, 2000, 10] structure).
    batch = 8
    input_dim = 64
    hidden_dims = [32, 32, 64, 16]

    key = jax.random.PRNGKey(0)
    kx, kp = jax.random.split(key)
    x = jax.random.normal(kx, (batch, input_dim), jnp.float32)

    weights, biases, relu_flags, enc_idx, num_layers = init_autoencoder_params(
        kp, input_dim, hidden_dims)

    enc, rec = features_autoencoder_forward(x, weights, biases, relu_flags, enc_idx)
    enc, rec = jax.block_until_ready((enc, rec))

    enc_ref, rec_ref = reference_forward(x, weights, biases, relu_flags, enc_idx)

    assert enc.shape == (batch, hidden_dims[-1]), enc.shape
    assert rec.shape == (batch, input_dim), rec.shape
    assert jnp.allclose(enc, enc_ref, atol=1e-2, rtol=1e-2), \
        float(jnp.max(jnp.abs(enc - enc_ref)))
    assert jnp.allclose(rec, rec_ref, atol=1e-2, rtol=1e-2), \
        float(jnp.max(jnp.abs(rec - rec_ref)))

    print("KERNEL_OK")
</pallas_src>

<mosaic_0001>
module attributes {stable_mosaic.version = 11 : i64} {
  func.func @kernel(%arg0: i32, %arg1: memref<8x128xbf16, #tpu.memory_space<vmem>>, %arg2: memref<128x128xbf16, #tpu.memory_space<vmem>>, %arg3: memref<128x128xbf16, #tpu.memory_space<vmem>>, %arg4: memref<128x128xbf16, #tpu.memory_space<vmem>>, %arg5: memref<128x128xbf16, #tpu.memory_space<vmem>>, %arg6: memref<128x128xbf16, #tpu.memory_space<vmem>>, %arg7: memref<128x128xbf16, #tpu.memory_space<vmem>>, %arg8: memref<128x128xbf16, #tpu.memory_space<vmem>>, %arg9: memref<128x128xbf16, #tpu.memory_space<vmem>>, %arg10: memref<1x128xf32, #tpu.memory_space<vmem>>, %arg11: memref<1x128xf32, #tpu.memory_space<vmem>>, %arg12: memref<1x128xf32, #tpu.memory_space<vmem>>, %arg13: memref<1x128xf32, #tpu.memory_space<vmem>>, %arg14: memref<1x128xf32, #tpu.memory_space<vmem>>, %arg15: memref<1x128xf32, #tpu.memory_space<vmem>>, %arg16: memref<1x128xf32, #tpu.memory_space<vmem>>, %arg17: memref<1x128xf32, #tpu.memory_space<vmem>>, %arg18: memref<8x128xf32, #tpu.memory_space<vmem>>, %arg19: memref<8x128xf32, #tpu.memory_space<vmem>>) attributes {dimension_semantics = [#tpu.dimension_semantics<parallel>], iteration_bounds = array<i64: 1>, scalar_prefetch = 0 : i64, scratch_operands = 0 : i64, tpu.core_type = #tpu.core_type<tc>, window_params = [{transform_indices = @transform_0, window_bounds = array<i64: 8, 128>}, {pipeline_mode = #tpu.pipeline_mode<synchronous>, transform_indices = @transform_1, window_bounds = array<i64: 128, 128>}, {pipeline_mode = #tpu.pipeline_mode<synchronous>, transform_indices = @transform_2, window_bounds = array<i64: 128, 128>}, {pipeline_mode = #tpu.pipeline_mode<synchronous>, transform_indices = @transform_3, window_bounds = array<i64: 128, 128>}, {pipeline_mode = #tpu.pipeline_mode<synchronous>, transform_indices = @transform_4, window_bounds = array<i64: 128, 128>}, {pipeline_mode = #tpu.pipeline_mode<synchronous>, transform_indices = @transform_5, window_bounds = array<i64: 128, 128>}, {pipeline_mode = #tpu.pipeline_mode<synchronous>, transform_indices = @transform_6, window_bounds = array<i64: 128, 128>}, {pipeline_mode = #tpu.pipeline_mode<synchronous>, transform_indices = @transform_7, window_bounds = array<i64: 128, 128>}, {pipeline_mode = #tpu.pipeline_mode<synchronous>, transform_indices = @transform_8, window_bounds = array<i64: 128, 128>}, {pipeline_mode = #tpu.pipeline_mode<synchronous>, transform_indices = @transform_9, window_bounds = array<i64: 1, 128>}, {pipeline_mode = #tpu.pipeline_mode<synchronous>, transform_indices = @transform_10, window_bounds = array<i64: 1, 128>}, {pipeline_mode = #tpu.pipeline_mode<synchronous>, transform_indices = @transform_11, window_bounds = array<i64: 1, 128>}, {pipeline_mode = #tpu.pipeline_mode<synchronous>, transform_indices = @transform_12, window_bounds = array<i64: 1, 128>}, {pipeline_mode = #tpu.pipeline_mode<synchronous>, transform_indices = @transform_13, window_bounds = array<i64: 1, 128>}, {pipeline_mode = #tpu.pipeline_mode<synchronous>, transform_indices = @transform_14, window_bounds = array<i64: 1, 128>}, {pipeline_mode = #tpu.pipeline_mode<synchronous>, transform_indices = @transform_15, window_bounds = array<i64: 1, 128>}, {pipeline_mode = #tpu.pipeline_mode<synchronous>, transform_indices = @transform_16, window_bounds = array<i64: 1, 128>}, {transform_indices = @transform_17, window_bounds = array<i64: 8, 128>}, {transform_indices = @transform_18, window_bounds = array<i64: 8, 128>}]} {
    %c0 = arith.constant 0 : index
    %c0_0 = arith.constant 0 : index
    %0 = vector.load %arg1[%c0, %c0_0] : memref<8x128xbf16, #tpu.memory_space<vmem>>, vector<8x128xbf16>
    %c0_1 = arith.constant 0 : index
    %c0_2 = arith.constant 0 : index
    %1 = vector.load %arg2[%c0_1, %c0_2] : memref<128x128xbf16, #tpu.memory_space<vmem>>, vector<128x128xbf16>
    %cst = arith.constant dense<0.000000e+00> : vector<8x128xf32>
    %2 = tpu.matmul %0, %1, %cst {dimension_numbers = #tpu.dot_dimension_numbers<[1], [0], [0], [1], [0, 0, 1, 1], [], []>} : vector<8x128xbf16>, vector<128x128xbf16>, vector<8x128xf32> -> vector<8x128xf32>
    %c0_3 = arith.constant 0 : index
    %c0_4 = arith.constant 0 : index
    %3 = vector.load %arg10[%c0_3, %c0_4] : memref<1x128xf32, #tpu.memory_space<vmem>>, vector<1x128xf32>
    %4 = vector.broadcast %3 : vector<1x128xf32> to vector<8x128xf32>
    %5 = arith.addf %2, %4 : vector<8x128xf32>
    %cst_5 = arith.constant 0.000000e+00 : f32
    %6 = vector.broadcast %cst_5 : f32 to vector<8x128xf32>
    %7 = arith.maximumf %5, %6 : vector<8x128xf32>
    %8 = arith.truncf %7 : vector<8x128xf32> to vector<8x128xbf16>
    %c0_6 = arith.constant 0 : index
    %c0_7 = arith.constant 0 : index
    %9 = vector.load %arg3[%c0_6, %c0_7] : memref<128x128xbf16, #tpu.memory_space<vmem>>, vector<128x128xbf16>
    %cst_8 = arith.constant dense<0.000000e+00> : vector<8x128xf32>
    %10 = tpu.matmul %8, %9, %cst_8 {dimension_numbers = #tpu.dot_dimension_numbers<[1], [0], [0], [1], [0, 0, 1, 1], [], []>} : vector<8x128xbf16>, vector<128x128xbf16>, vector<8x128xf32> -> vector<8x128xf32>
    %c0_9 = arith.constant 0 : index
    %c0_10 = arith.constant 0 : index
    %11 = vector.load %arg11[%c0_9, %c0_10] : memref<1x128xf32, #tpu.memory_space<vmem>>, vector<1x128xf32>
    %12 = vector.broadcast %11 : vector<1x128xf32> to vector<8x128xf32>
    %13 = arith.addf %10, %12 : vector<8x128xf32>
    %cst_11 = arith.constant 0.000000e+00 : f32
    %14 = vector.broadcast %cst_11 : f32 to vector<8x128xf32>
    %15 = arith.maximumf %13, %14 : vector<8x128xf32>
    %16 = arith.truncf %15 : vector<8x128xf32> to vector<8x128xbf16>
    %c0_12 = arith.constant 0 : index
    %c0_13 = arith.constant 0 : index
    %17 = vector.load %arg4[%c0_12, %c0_13] : memref<128x128xbf16, #tpu.memory_space<vmem>>, vector<128x128xbf16>
    %cst_14 = arith.constant dense<0.000000e+00> : vector<8x128xf32>
    %18 = tpu.matmul %16, %17, %cst_14 {dimension_numbers = #tpu.dot_dimension_numbers<[1], [0], [0], [1], [0, 0, 1, 1], [], []>} : vector<8x128xbf16>, vector<128x128xbf16>, vector<8x128xf32> -> vector<8x128xf32>
    %c0_15 = arith.constant 0 : index
    %c0_16 = arith.constant 0 : index
    %19 = vector.load %arg12[%c0_15, %c0_16] : memref<1x128xf32, #tpu.memory_space<vmem>>, vector<1x128xf32>
    %20 = vector.broadcast %19 : vector<1x128xf32> to vector<8x128xf32>
    %21 = arith.addf %18, %20 : vector<8x128xf32>
    %cst_17 = arith.constant 0.000000e+00 : f32
    %22 = vector.broadcast %cst_17 : f32 to vector<8x128xf32>
    %23 = arith.maximumf %21, %22 : vector<8x128xf32>
    %24 = arith.truncf %23 : vector<8x128xf32> to vector<8x128xbf16>
    %c0_18 = arith.constant 0 : index
    %c0_19 = arith.constant 0 : index
    %25 = vector.load %arg5[%c0_18, %c0_19] : memref<128x128xbf16, #tpu.memory_space<vmem>>, vector<128x128xbf16>
    %cst_20 = arith.constant dense<0.000000e+00> : vector<8x128xf32>
    %26 = tpu.matmul %24, %25, %cst_20 {dimension_numbers = #tpu.dot_dimension_numbers<[1], [0], [0], [1], [0, 0, 1, 1], [], []>} : vector<8x128xbf16>, vector<128x128xbf16>, vector<8x128xf32> -> vector<8x128xf32>
    %c0_21 = arith.constant 0 : index
    %c0_22 = arith.constant 0 : index
    %27 = vector.load %arg13[%c0_21, %c0_22] : memref<1x128xf32, #tpu.memory_space<vmem>>, vector<1x128xf32>
    %28 = vector.broadcast %27 : vector<1x128xf32> to vector<8x128xf32>
    %29 = arith.addf %26, %28 : vector<8x128xf32>
    %c0_23 = arith.constant 0 : index
    %c0_24 = arith.constant 0 : index
    %30 = vector.load %arg18[%c0_23, %c0_24] : memref<8x128xf32, #tpu.memory_space<vmem>>, vector<8x128xf32>
    tpu.vector_store %arg18[%c0_23, %c0_24], %29 {strides = array<i32>} : memref<8x128xf32, #tpu.memory_space<vmem>>, vector<8x128xf32>,
    %31 = arith.truncf %29 : vector<8x128xf32> to vector<8x128xbf16>
    %c0_25 = arith.constant 0 : index
    %c0_26 = arith.constant 0 : index
    %32 = vector.load %arg6[%c0_25, %c0_26] : memref<128x128xbf16, #tpu.memory_space<vmem>>, vector<128x128xbf16>
    %cst_27 = arith.constant dense<0.000000e+00> : vector<8x128xf32>
    %33 = tpu.matmul %31, %32, %cst_27 {dimension_numbers = #tpu.dot_dimension_numbers<[1], [0], [0], [1], [0, 0, 1, 1], [], []>} : vector<8x128xbf16>, vector<128x128xbf16>, vector<8x128xf32> -> vector<8x128xf32>
    %c0_28 = arith.constant 0 : index
    %c0_29 = arith.constant 0 : index
    %34 = vector.load %arg14[%c0_28, %c0_29] : memref<1x128xf32, #tpu.memory_space<vmem>>, vector<1x128xf32>
    %35 = vector.broadcast %34 : vector<1x128xf32> to vector<8x128xf32>
    %36 = arith.addf %33, %35 : vector<8x128xf32>
    %cst_30 = arith.constant 0.000000e+00 : f32
    %37 = vector.broadcast %cst_30 : f32 to vector<8x128xf32>
    %38 = arith.maximumf %36, %37 : vector<8x128xf32>
    %39 = arith.truncf %38 : vector<8x128xf32> to vector<8x128xbf16>
    %c0_31 = arith.constant 0 : index
    %c0_32 = arith.constant 0 : index
    %40 = vector.load %arg7[%c0_31, %c0_32] : memref<128x128xbf16, #tpu.memory_space<vmem>>, vector<128x128xbf16>
    %cst_33 = arith.constant dense<0.000000e+00> : vector<8x128xf32>
    %41 = tpu.matmul %39, %40, %cst_33 {dimension_numbers = #tpu.dot_dimension_numbers<[1], [0], [0], [1], [0, 0, 1, 1], [], []>} : vector<8x128xbf16>, vector<128x128xbf16>, vector<8x128xf32> -> vector<8x128xf32>
    %c0_34 = arith.constant 0 : index
    %c0_35 = arith.constant 0 : index
    %42 = vector.load %arg15[%c0_34, %c0_35] : memref<1x128xf32, #tpu.memory_space<vmem>>, vector<1x128xf32>
    %43 = vector.broadcast %42 : vector<1x128xf32> to vector<8x128xf32>
    %44 = arith.addf %41, %43 : vector<8x128xf32>
    %cst_36 = arith.constant 0.000000e+00 : f32
    %45 = vector.broadcast %cst_36 : f32 to vector<8x128xf32>
    %46 = arith.maximumf %44, %45 : vector<8x128xf32>
    %47 = arith.truncf %46 : vector<8x128xf32> to vector<8x128xbf16>
    %c0_37 = arith.constant 0 : index
    %c0_38 = arith.constant 0 : index
    %48 = vector.load %arg8[%c0_37, %c0_38] : memref<128x128xbf16, #tpu.memory_space<vmem>>, vector<128x128xbf16>
    %cst_39 = arith.constant dense<0.000000e+00> : vector<8x128xf32>
    %49 = tpu.matmul %47, %48, %cst_39 {dimension_numbers = #tpu.dot_dimension_numbers<[1], [0], [0], [1], [0, 0, 1, 1], [], []>} : vector<8x128xbf16>, vector<128x128xbf16>, vector<8x128xf32> -> vector<8x128xf32>
    %c0_40 = arith.constant 0 : index
    %c0_41 = arith.constant 0 : index
    %50 = vector.load %arg16[%c0_40, %c0_41] : memref<1x128xf32, #tpu.memory_space<vmem>>, vector<1x128xf32>
    %51 = vector.broadcast %50 : vector<1x128xf32> to vector<8x128xf32>
    %52 = arith.addf %49, %51 : vector<8x128xf32>
    %cst_42 = arith.constant 0.000000e+00 : f32
    %53 = vector.broadcast %cst_42 : f32 to vector<8x128xf32>
    %54 = arith.maximumf %52, %53 : vector<8x128xf32>
    %55 = arith.truncf %54 : vector<8x128xf32> to vector<8x128xbf16>
    %c0_43 = arith.constant 0 : index
    %c0_44 = arith.constant 0 : index
    %56 = vector.load %arg9[%c0_43, %c0_44] : memref<128x128xbf16, #tpu.memory_space<vmem>>, vector<128x128xbf16>
    %cst_45 = arith.constant dense<0.000000e+00> : vector<8x128xf32>
    %57 = tpu.matmul %55, %56, %cst_45 {dimension_numbers = #tpu.dot_dimension_numbers<[1], [0], [0], [1], [0, 0, 1, 1], [], []>} : vector<8x128xbf16>, vector<128x128xbf16>, vector<8x128xf32> -> vector<8x128xf32>
    %c0_46 = arith.constant 0 : index
    %c0_47 = arith.constant 0 : index
    %58 = vector.load %arg17[%c0_46, %c0_47] : memref<1x128xf32, #tpu.memory_space<vmem>>, vector<1x128xf32>
    %59 = vector.broadcast %58 : vector<1x128xf32> to vector<8x128xf32>
    %60 = arith.addf %57, %59 : vector<8x128xf32>
    %c0_48 = arith.constant 0 : index
    %c0_49 = arith.constant 0 : index
    %61 = vector.load %arg19[%c0_48, %c0_49] : memref<8x128xf32, #tpu.memory_space<vmem>>, vector<8x128xf32>
    tpu.vector_store %arg19[%c0_48, %c0_49], %60 {strides = array<i32>} : memref<8x128xf32, #tpu.memory_space<vmem>>, vector<8x128xf32>,
    return
  }
  func.func @transform_0(%arg0: i32) -> (i32, i32) {
    %c0_i32 = arith.constant 0 : i32
    %c0_i32_0 = arith.constant 0 : i32
    return %arg0, %c0_i32 : i32, i32
  }
  func.func @transform_1(%arg0: i32) -> (i32, i32) {
    %c0_i32 = arith.constant 0 : i32
    %c0_i32_0 = arith.constant 0 : i32
    %c0_i32_1 = arith.constant 0 : i32
    return %c0_i32, %c0_i32_0 : i32, i32
  }
  func.func @transform_2(%arg0: i32) -> (i32, i32) {
    %c0_i32 = arith.constant 0 : i32
    %c0_i32_0 = arith.constant 0 : i32
    %c0_i32_1 = arith.constant 0 : i32
    return %c0_i32, %c0_i32_0 : i32, i32
  }
  func.func @transform_3(%arg0: i32) -> (i32, i32) {
    %c0_i32 = arith.constant 0 : i32
    %c0_i32_0 = arith.constant 0 : i32
    %c0_i32_1 = arith.constant 0 : i32
    return %c0_i32, %c0_i32_0 : i32, i32
  }
  func.func @transform_4(%arg0: i32) -> (i32, i32) {
    %c0_i32 = arith.constant 0 : i32
    %c0_i32_0 = arith.constant 0 : i32
    %c0_i32_1 = arith.constant 0 : i32
    return %c0_i32, %c0_i32_0 : i32, i32
  }
  func.func @transform_5(%arg0: i32) -> (i32, i32) {
    %c0_i32 = arith.constant 0 : i32
    %c0_i32_0 = arith.constant 0 : i32
    %c0_i32_1 = arith.constant 0 : i32
    return %c0_i32, %c0_i32_0 : i32, i32
  }
  func.func @transform_6(%arg0: i32) -> (i32, i32) {
    %c0_i32 = arith.constant 0 : i32
    %c0_i32_0 = arith.constant 0 : i32
    %c0_i32_1 = arith.constant 0 : i32
    return %c0_i32, %c0_i32_0 : i32, i32
  }
  func.func @transform_7(%arg0: i32) -> (i32, i32) {
    %c0_i32 = arith.constant 0 : i32
    %c0_i32_0 = arith.constant 0 : i32
    %c0_i32_1 = arith.constant 0 : i32
    return %c0_i32, %c0_i32_0 : i32, i32
  }
  func.func @transform_8(%arg0: i32) -> (i32, i32) {
    %c0_i32 = arith.constant 0 : i32
    %c0_i32_0 = arith.constant 0 : i32
    %c0_i32_1 = arith.constant 0 : i32
    return %c0_i32, %c0_i32_0 : i32, i32
  }
  func.func @transform_9(%arg0: i32) -> (i32, i32) {
    %c0_i32 = arith.constant 0 : i32
    %c0_i32_0 = arith.constant 0 : i32
    %c0_i32_1 = arith.constant 0 : i32
    return %c0_i32, %c0_i32_0 : i32, i32
  }
  func.func @transform_10(%arg0: i32) -> (i32, i32) {
    %c0_i32 = arith.constant 0 : i32
    %c0_i32_0 = arith.constant 0 : i32
    %c0_i32_1 = arith.constant 0 : i32
    return %c0_i32, %c0_i32_0 : i32, i32
  }
  func.func @transform_11(%arg0: i32) -> (i32, i32) {
    %c0_i32 = arith.constant 0 : i32
    %c0_i32_0 = arith.constant 0 : i32
    %c0_i32_1 = arith.constant 0 : i32
    return %c0_i32, %c0_i32_0 : i32, i32
  }
  func.func @transform_12(%arg0: i32) -> (i32, i32) {
    %c0_i32 = arith.constant 0 : i32
    %c0_i32_0 = arith.constant 0 : i32
    %c0_i32_1 = arith.constant 0 : i32
    return %c0_i32, %c0_i32_0 : i32, i32
  }
  func.func @transform_13(%arg0: i32) -> (i32, i32) {
    %c0_i32 = arith.constant 0 : i32
    %c0_i32_0 = arith.constant 0 : i32
    %c0_i32_1 = arith.constant 0 : i32
    return %c0_i32, %c0_i32_0 : i32, i32
  }
  func.func @transform_14(%arg0: i32) -> (i32, i32) {
    %c0_i32 = arith.constant 0 : i32
    %c0_i32_0 = arith.constant 0 : i32
    %c0_i32_1 = arith.constant 0 : i32
    return %c0_i32, %c0_i32_0 : i32, i32
  }
  func.func @transform_15(%arg0: i32) -> (i32, i32) {
    %c0_i32 = arith.constant 0 : i32
    %c0_i32_0 = arith.constant 0 : i32
    %c0_i32_1 = arith.constant 0 : i32
    return %c0_i32, %c0_i32_0 : i32, i32
  }
  func.func @transform_16(%arg0: i32) -> (i32, i32) {
    %c0_i32 = arith.constant 0 : i32
    %c0_i32_0 = arith.constant 0 : i32
    %c0_i32_1 = arith.constant 0 : i32
    return %c0_i32, %c0_i32_0 : i32, i32
  }
  func.func @transform_17(%arg0: i32) -> (i32, i32) {
    %c0_i32 = arith.constant 0 : i32
    %c0_i32_0 = arith.constant 0 : i32
    return %arg0, %c0_i32 : i32, i32
  }
  func.func @transform_18(%arg0: i32) -> (i32, i32) {
    %c0_i32 = arith.constant 0 : i32
    %c0_i32_0 = arith.constant 0 : i32
    return %arg0, %c0_i32 : i32, i32
  }
}

</mosaic_0001>

<bundles_post_ra>
// kernel: features_autoencoder_forward.1
= control target key start
LH: loop header
LB: loop body
LE: loop exit
PB: predicated region body
PF: predicated region fallthrough
CT: control target
= control target key end

     0   :  { %s1835_s0 = inlined_call_operand.vmem [shape: bf16[8,128], index: 0, kind: input, shape index: {}]   ;;  %s1836_s1 = inlined_call_operand.vmem [shape: bf16[128,128], index: 1, kind: input, shape index: {}]   ;;  %s1837_s2 = inlined_call_operand.vmem [shape: bf16[128,128], index: 2, kind: input, shape index: {}]   ;;  %s1838_s3 = inlined_call_operand.vmem [shape: bf16[128,128], index: 3, kind: input, shape index: {}]   ;;  %s1839_s4 = inlined_call_operand.vmem [shape: bf16[128,128], index: 4, kind: input, shape index: {}]   ;;  %s1840_s5 = inlined_call_operand.vmem [shape: bf16[128,128], index: 5, kind: input, shape index: {}]   ;;  %s1841_s6 = inlined_call_operand.vmem [shape: bf16[128,128], index: 6, kind: input, shape index: {}]   ;;  %s1842_s7 = inlined_call_operand.vmem [shape: bf16[128,128], index: 7, kind: input, shape index: {}]   ;;  %s1843_s8 = inlined_call_operand.vmem [shape: bf16[128,128], index: 8, kind: input, shape index: {}]   ;;  %s1844_s9 = inlined_call_operand.vmem [shape: f32[1,128], index: 9, kind: input, shape index: {}]   ;;  %s1845_s10 = inlined_call_operand.vmem [shape: f32[1,128], index: 10, kind: input, shape index: {}]   ;;  %s1846_s11 = inlined_call_operand.vmem [shape: f32[1,128], index: 11, kind: input, shape index: {}]   ;;  %s1847_s12 = inlined_call_operand.vmem [shape: f32[1,128], index: 12, kind: input, shape index: {}]   ;;  %s1848_s13 = inlined_call_operand.vmem [shape: f32[1,128], index: 13, kind: input, shape index: {}]   ;;  %s1849_s14 = inlined_call_operand.vmem [shape: f32[1,128], index: 14, kind: input, shape index: {}]   ;;  %s1850_s15 = inlined_call_operand.vmem [shape: f32[1,128], index: 15, kind: input, shape index: {}]   ;;  %s1851_s16 = inlined_call_operand.vmem [shape: f32[1,128], index: 16, kind: input, shape index: {}]   ;;  %s1852_s17 = inlined_call_operand.hbm [shape: f32[8,128], index: 17, kind: output, shape index: {0}]   ;;  %s1853_s18 = inlined_call_operand.hbm [shape: f32[8,128], index: 18, kind: output, shape index: {1}]  }
   0x1   :  { %1856 = sst [smem:[#allocation8_spill]] %s1835_s0 }
   0x2   :  { %1857 = sst [smem:[#allocation9_spill]] %s1836_s1 }
   0x3   :  { %1858 = sst [smem:[#allocation10_spill]] %s1837_s2 }
   0x4   :  { %24 = vsyncpa [#allocation3], 0  ;;  %s1859_s29 = sld [smem:[#allocation9_spill]]  ;;  %v1413_v1 = vmov 0.0   ;;  %vm1414_vm0 = vmmov 0   ;;  %s1860_s22 = sld [smem:[#allocation10_spill]] }
   0x5   :  { %1137 = vmatprep.subr.bf16.mxu0 %v1413_v1  ;;  %1157 = vmatprep.subr.bf16.mxu1 %v1413_v1  ;;  %s1861_s19 = sld [smem:[#allocation8_spill]] }
   0x6   :  { %1153 = vmatprep.mubr.msk.bf16.mxu0 %vm1414_vm0, %v1413_v1  ;;  %1173 = vmatprep.mubr.msk.bf16.mxu1 %vm1414_vm0, %v1413_v1 }
   0xa   :  { %v1301_v0 = vld [vmem:[%s1859_s29] sm:$0xff]   ;;  %v1302_v2 = vld [vmem:[%s1859_s29 + $0x8] sm:$0xff]   ;;  %v1303_v3 = vld [vmem:[%s1859_s29 + $0x10] sm:$0xff]  }
   0xb   :  { %1138 = vmatpush3.bf16.msra.mxu0 %v1301_v0  ;;  %v1309_v4 = vld [vmem:[%s1860_s22] sm:$0xff]   ;;  %v1304_v5 = vld [vmem:[%s1859_s29 + $0x18] sm:$0xff]   ;;  %v1310_v6 = vld [vmem:[%s1860_s22 + $0x8] sm:$0xff]  }
   0xc   :  { %1139 = vmatprep.subr.bf16.mxu0 %v1413_v1  ;;  %1158 = vmatpush3.bf16.msra.mxu1 %v1309_v4  ;;  %v1305_v7 = vld [vmem:[%s1859_s29 + $0x20] sm:$0xff]   ;;  %v1311_v8 = vld [vmem:[%s1860_s22 + $0x10] sm:$0xff]   ;;  %v1306_v9 = vld [vmem:[%s1859_s29 + $0x28] sm:$0xff]  }
   0xd   :  { %1159 = vmatprep.subr.bf16.mxu1 %v1413_v1  ;;  %v1312_v10 = vld [vmem:[%s1860_s22 + $0x18] sm:$0xff]   ;;  %v1307_v11 = vld [vmem:[%s1859_s29 + $0x30] sm:$0xff]   ;;  %v1313_v12 = vld [vmem:[%s1860_s22 + $0x20] sm:$0xff]  }
   0xe   :  { %v1308_v13 = vld [vmem:[%s1859_s29 + $0x38] sm:$0xff]   ;;  %v1314_v14 = vld [vmem:[%s1860_s22 + $0x28] sm:$0xff]   ;;  %v61_v15 = vld [vmem:[%s1861_s19] sm:$0xf] }
   0xf   :  { %1140 = vmatpush3.bf16.msra.mxu0 %v1302_v2 }
  0x10   :  { %1141 = vmatprep.subr.bf16.mxu0 %v1413_v1  ;;  %1160 = vmatpush3.bf16.msra.mxu1 %v1310_v6 }
  0x11   :  { %1161 = vmatprep.subr.bf16.mxu1 %v1413_v1 }
  0x13   :  { %1142 = vmatpush3.bf16.msra.mxu0 %v1303_v3 }
  0x14   :  { %1143 = vmatprep.subr.bf16.mxu0 %v1413_v1  ;;  %1162 = vmatpush3.bf16.msra.mxu1 %v1311_v8 }
  0x15   :  { %1163 = vmatprep.subr.bf16.mxu1 %v1413_v1 }
  0x17   :  { %1144 = vmatpush3.bf16.msra.mxu0 %v1304_v5 }
  0x18   :  { %1145 = vmatprep.subr.bf16.mxu0 %v1413_v1  ;;  %1164 = vmatpush3.bf16.msra.mxu1 %v1312_v10 }
  0x19   :  { %1165 = vmatprep.subr.bf16.mxu1 %v1413_v1 }
  0x1b   :  { %1146 = vmatpush3.bf16.msra.mxu0 %v1305_v7 }
  0x1c   :  { %1147 = vmatprep.subr.bf16.mxu0 %v1413_v1  ;;  %1166 = vmatpush3.bf16.msra.mxu1 %v1313_v12 }
  0x1d   :  { %1167 = vmatprep.subr.bf16.mxu1 %v1413_v1 }
  0x1f   :  { %1148 = vmatpush3.bf16.msra.mxu0 %v1306_v9 }
  0x20   :  { %1149 = vmatprep.subr.bf16.mxu0 %v1413_v1  ;;  %1168 = vmatpush3.bf16.msra.mxu1 %v1314_v14 }
  0x21   :  { %1169 = vmatprep.subr.bf16.mxu1 %v1413_v1 }
  0x23   :  { %1150 = vmatpush3.bf16.msra.mxu0 %v1307_v11 }
  0x24   :  { %1151 = vmatprep.subr.bf16.mxu0 %v1413_v1 }
  0x27   :  { %1152 = vmatpush3.bf16.msra.mxu0 %v1308_v13 }
  0x28   :  { %1177 = vmatprep.subr.bf16.mxu0 %v1413_v1 }
  0x2a   :  { %1154 = vmatmul.mubr.bf16.vlgmr.msra.gmra.mrb[0].mxu0 %v61_v15 }
  0x2b   :  { %1193 = vmatprep.mubr.msk.bf16.mxu0 %vm1414_vm0, %v1413_v1 }
  0x2c   :  { %25 = vsyncpa [#allocation5], 0  ;;  %v1315_v16 = vld [vmem:[%s1860_s22 + $0x30] sm:$0xff]   ;;  %v1316_v17 = vld [vmem:[%s1860_s22 + $0x38] sm:$0xff]   ;;  %s1415_s22 = smov [#allocation2]  }
  0x2d   :  { %1170 = vmatpush3.bf16.msra.mxu1 %v1315_v16  ;;  %v1317_v18 = vld [vmem:[%s1838_s3] sm:$0xff]   ;;  %v1318_v19 = vld [vmem:[%s1838_s3 + $0x8] sm:$0xff]   ;;  %v1319_v20 = vld [vmem:[%s1838_s3 + $0x10] sm:$0xff]   ;;  %s971_s28 = sshll.u32 %s1415_s22, 4  ;;  %s972_s28 = int_to_ptr.vmem [resolvable:$true] %s971_s28 }
  0x2e   :  { %1171 = vmatprep.subr.bf16.mxu1 %v1413_v1  ;;  %1178 = vmatpush3.bf16.msra.mxu0 %v1317_v18  ;;  %v1320_v21 = vld [vmem:[%s1838_s3 + $0x18] sm:$0xff]   ;;  %v1321_v22 = vld [vmem:[%s1838_s3 + $0x20] sm:$0xff]   ;;  %v1322_v23 = vld [vmem:[%s1838_s3 + $0x28] sm:$0xff]   ;;  %p1370_p1 = scmp.lt.s32.totalorder %s972_s28, %s972_s28 }
  0x2f   :  { %1179 = vmatprep.subr.bf16.mxu0 %v1413_v1  ;;  %v993_v24 = vld [vmem:[%s1844_s9] ss:$0 sm:$0xff]  ;;  %v1323_v32 = vld [vmem:[%s1838_s3 + $0x30] sm:$0xff]   ;;  %v1324_v33 = vld [vmem:[%s1838_s3 + $0x38] sm:$0xff]  }
  0x30   :  { %v1325_v34 = vld [vmem:[%s1839_s4] sm:$0xff]   ;;  %v1326_v35 = vld [vmem:[%s1839_s4 + $0x8] sm:$0xff]   ;;  %v1327_v36 = vld [vmem:[%s1839_s4 + $0x10] sm:$0xff]  }
  0x31   :  { %1172 = vmatpush3.bf16.msra.mxu1 %v1316_v17  ;;  %v1328_v37 = vld [vmem:[%s1839_s4 + $0x18] sm:$0xff]   ;;  %v1329_v38 = vld [vmem:[%s1839_s4 + $0x20] sm:$0xff]   ;;  %v1330_v39 = vld [vmem:[%s1839_s4 + $0x28] sm:$0xff]  }
  0x32   :  { %1197 = vmatprep.subr.bf16.mxu1 %v1413_v1  ;;  %1180 = vmatpush3.bf16.msra.mxu0 %v1318_v19  ;;  %v1002_v40 = vld [vmem:[%s1845_s10] ss:$0 sm:$0xff]  ;;  %v1331_v48 = vld [vmem:[%s1839_s4 + $0x30] sm:$0xff]   ;;  %v1332_v49 = vld [vmem:[%s1839_s4 + $0x38] sm:$0xff]   ;;  %s1365_s4 = scalar_lea.vmem %s972_s28, 128 }
  0x33   :  { %1181 = vmatprep.subr.bf16.mxu0 %v1413_v1  ;;  %v1333_v50 = vld [vmem:[%s1840_s5] sm:$0xff]   ;;  %v1334_v51 = vld [vmem:[%s1840_s5 + $0x8] sm:$0xff]   ;;  %v1335_v52 = vld [vmem:[%s1840_s5 + $0x10] sm:$0xff]   ;;  %p1366_p0 = scmp.ne.s32.totalorder %s972_s28, %s1365_s4  ;;  %p1371_p2 = scmp.lt.s32.totalorder %s1365_s4, %s1365_s4 }
  0x34   :  { %v1336_v53 = vld [vmem:[%s1840_s5 + $0x18] sm:$0xff]   ;;  %v1337_v54 = vld [vmem:[%s1840_s5 + $0x20] sm:$0xff]   ;;  %v1338_v55 = vld [vmem:[%s1840_s5 + $0x28] sm:$0xff]  }
  0x35   :  { %v1339_v56 = vld [vmem:[%s1840_s5 + $0x30] sm:$0xff]   ;;  %v1011_v57 = vld [vmem:[%s1846_s11] ss:$0 sm:$0xff]  ;;  %v1340_v2 = vld [vmem:[%s1840_s5 + $0x38] sm:$0xff]   ;;  %p1372_p3 = por %p1371_p2, %p1370_p1 }
  0x36   :  { %1182 = vmatpush3.bf16.msra.mxu0 %v1319_v20  ;;  %v1341_v3 = vld [vmem:[%s1841_s6] sm:$0xff]   ;;  %v1342_v4 = vld [vmem:[%s1841_s6 + $0x8] sm:$0xff]   ;;  %v1343_v5 = vld [vmem:[%s1841_s6 + $0x10] sm:$0xff]  }
  0x37   :  { %1183 = vmatprep.subr.bf16.mxu0 %v1413_v1  ;;  %v1344_v6 = vld [vmem:[%s1841_s6 + $0x18] sm:$0xff]   ;;  %v1345_v7 = vld [vmem:[%s1841_s6 + $0x20] sm:$0xff]   ;;  %v1346_v8 = vld [vmem:[%s1841_s6 + $0x28] sm:$0xff]   ;;  %p1373_p4 = pnand %p1372_p3, %p1366_p0 }
  0x38   :  { %v1020_v9 = vld [vmem:[%s1847_s12] ss:$0 sm:$0xff]  ;;  %v1347_v16 = vld [vmem:[%s1841_s6 + $0x30] sm:$0xff]   ;;  %v1348_v17 = vld [vmem:[%s1841_s6 + $0x38] sm:$0xff]  }
  0x39   :  { %v1349_v18 = vld [vmem:[%s1842_s7] sm:$0xff]   ;;  %v1350_v19 = vld [vmem:[%s1842_s7 + $0x8] sm:$0xff]   ;;  %v1351_v20 = vld [vmem:[%s1842_s7 + $0x10] sm:$0xff]  }
  0x3a   :  { %1184 = vmatpush3.bf16.msra.mxu0 %v1320_v21  ;;  %v1352_v21 = vld [vmem:[%s1842_s7 + $0x18] sm:$0xff]  }
  0x3b   :  { %1185 = vmatprep.subr.bf16.mxu0 %v1413_v1 }
  0x3e   :  { %1186 = vmatpush3.bf16.msra.mxu0 %v1321_v22  ;;  %v1353_v22 = vld [vmem:[%s1842_s7 + $0x20] sm:$0xff]  }
  0x3f   :  { %1187 = vmatprep.subr.bf16.mxu0 %v1413_v1 }
  0x42   :  { %1188 = vmatpush3.bf16.msra.mxu0 %v1322_v23  ;;  %v1354_v23 = vld [vmem:[%s1842_s7 + $0x28] sm:$0xff]  }
  0x43   :  { %1189 = vmatprep.subr.bf16.mxu0 %v1413_v1 }
  0x46   :  { %1190 = vmatpush3.bf16.msra.mxu0 %v1323_v32  ;;  %v1355_v32 = vld [vmem:[%s1842_s7 + $0x30] sm:$0xff]  }
  0x47   :  { %1191 = vmatprep.subr.bf16.mxu0 %v1413_v1 }
  0x4a   :  { %1192 = vmatpush3.bf16.msra.mxu0 %v1324_v33  ;;  %v1356_v33 = vld [vmem:[%s1842_s7 + $0x38] sm:$0xff]  }
  0x4b   :  { %1217 = vmatprep.subr.bf16.mxu0 %v1413_v1 }
  0xfd   :  { %v167_v25 = vpop.f32.mrb[0].mxu0 }
  0xfe   :  { %v168_v26 = vadd.f32 %v993_v24, %v167_v25  ;;  %v1155_v27 = vpop.f32.mrb[1].mxu0  ;;  %v1029_v24 = vld [vmem:[%s1848_s13] ss:$0 sm:$0xff] }
  0xff   :  { %v170_v28 = vpop.f32.mrb[2].mxu0 }
 0x100   :  { %v173_v29 = vmax.f32 %v168_v26, 0.0  ;;  %v1156_v30 = vpop.f32.mrb[3].mxu0 }
 0x102   :  { %v174_v31 = vpack.c.bf16 %v173_v29, %v173_v29 }
 0x104   :  { %1174 = vmatmul.mubr.bf16.vlgmr.msra.gmra.mrb[0].mxu1 %v174_v31 }
 0x105   :  { %1213 = vmatprep.mubr.msk.bf16.mxu1 %vm1414_vm0, %v1413_v1  ;;  %1198 = vmatpush3.bf16.msra.mxu1 %v1325_v34  ;;  %v1357_v34 = vld [vmem:[%s1843_s8] sm:$0xff]  }
 0x106   :  { %1199 = vmatprep.subr.bf16.mxu1 %v1413_v1 }
 0x109   :  { %1200 = vmatpush3.bf16.msra.mxu1 %v1326_v35  ;;  %v1358_v35 = vld [vmem:[%s1843_s8 + $0x8] sm:$0xff]  }
 0x10a   :  { %1201 = vmatprep.subr.bf16.mxu1 %v1413_v1 }
 0x10d   :  { %1202 = vmatpush3.bf16.msra.mxu1 %v1327_v36  ;;  %v1359_v36 = vld [vmem:[%s1843_s8 + $0x10] sm:$0xff]  }
 0x10e   :  { %1203 = vmatprep.subr.bf16.mxu1 %v1413_v1 }
 0x111   :  { %1204 = vmatpush3.bf16.msra.mxu1 %v1328_v37  ;;  %v1360_v37 = vld [vmem:[%s1843_s8 + $0x18] sm:$0xff]  }
 0x112   :  { %1205 = vmatprep.subr.bf16.mxu1 %v1413_v1 }
 0x115   :  { %1206 = vmatpush3.bf16.msra.mxu1 %v1329_v38  ;;  %v1361_v38 = vld [vmem:[%s1843_s8 + $0x20] sm:$0xff]  }
 0x116   :  { %1207 = vmatprep.subr.bf16.mxu1 %v1413_v1 }
 0x119   :  { %1208 = vmatpush3.bf16.msra.mxu1 %v1330_v39  ;;  %v1362_v39 = vld [vmem:[%s1843_s8 + $0x28] sm:$0xff]  }
 0x11a   :  { %1209 = vmatprep.subr.bf16.mxu1 %v1413_v1 }
 0x11d   :  { %1210 = vmatpush3.bf16.msra.mxu1 %v1331_v48  ;;  %v1363_v48 = vld [vmem:[%s1843_s8 + $0x30] sm:$0xff]  }
 0x11e   :  { %1211 = vmatprep.subr.bf16.mxu1 %v1413_v1 }
 0x121   :  { %1212 = vmatpush3.bf16.msra.mxu1 %v1332_v49  ;;  %v1364_v49 = vld [vmem:[%s1843_s8 + $0x38] sm:$0xff]  }
 0x122   :  { %1237 = vmatprep.subr.bf16.mxu1 %v1413_v1 }
 0x1d7   :  { %v280_v41 = vpop.f32.mrb[0].mxu1 }
 0x1d8   :  { %v281_v42 = vadd.f32 %v1002_v40, %v280_v41  ;;  %v1175_v43 = vpop.f32.mrb[1].mxu1  ;;  %v1038_v40 = vld [vmem:[%s1849_s14] ss:$0 sm:$0xff] }
 0x1d9   :  { %v283_v44 = vpop.f32.mrb[2].mxu1 }
 0x1da   :  { %v286_v45 = vmax.f32 %v281_v42, 0.0  ;;  %v1176_v46 = vpop.f32.mrb[3].mxu1 }
 0x1dc   :  { %v287_v47 = vpack.c.bf16 %v286_v45, %v286_v45 }
 0x1de   :  { %1194 = vmatmul.mubr.bf16.vlgmr.msra.gmra.mrb[4].mxu0 %v287_v47 }
 0x1df   :  { %1233 = vmatprep.mubr.msk.bf16.mxu0 %vm1414_vm0, %v1413_v1  ;;  %1218 = vmatpush3.bf16.msra.mxu0 %v1333_v50  ;;  %v1047_v50 = vld [vmem:[%s1850_s15] ss:$0 sm:$0xff] }
 0x1e0   :  { %1219 = vmatprep.subr.bf16.mxu0 %v1413_v1 }
 0x1e3   :  { %1220 = vmatpush3.bf16.msra.mxu0 %v1334_v51 }
 0x1e4   :  { %1221 = vmatprep.subr.bf16.mxu0 %v1413_v1 }
 0x1e7   :  { %1222 = vmatpush3.bf16.msra.mxu0 %v1335_v52 }
 0x1e8   :  { %1223 = vmatprep.subr.bf16.mxu0 %v1413_v1 }
 0x1eb   :  { %1224 = vmatpush3.bf16.msra.mxu0 %v1336_v53 }
 0x1ec   :  { %1225 = vmatprep.subr.bf16.mxu0 %v1413_v1 }
 0x1ef   :  { %1226 = vmatpush3.bf16.msra.mxu0 %v1337_v54 }
 0x1f0   :  { %1227 = vmatprep.subr.bf16.mxu0 %v1413_v1 }
 0x1f3   :  { %1228 = vmatpush3.bf16.msra.mxu0 %v1338_v55 }
 0x1f4   :  { %1229 = vmatprep.subr.bf16.mxu0 %v1413_v1 }
 0x1f7   :  { %1230 = vmatpush3.bf16.msra.mxu0 %v1339_v56 }
 0x1f8   :  { %1231 = vmatprep.subr.bf16.mxu0 %v1413_v1 }
 0x1fb   :  { %1232 = vmatpush3.bf16.msra.mxu0 %v1340_v2 }
 0x1fc   :  { %1257 = vmatprep.subr.bf16.mxu0 %v1413_v1 }
 0x2b1   :  { %v393_v58 = vpop.f32.mrb[4].mxu0 }
 0x2b2   :  { %v394_v59 = vadd.f32 %v1011_v57, %v393_v58  ;;  %v1195_v60 = vpop.f32.mrb[5].mxu0 }
 0x2b3   :  { %v396_v61 = vpop.f32.mrb[6].mxu0 }
 0x2b4   :  { %v399_v62 = vmax.f32 %v394_v59, 0.0  ;;  %v1196_v63 = vpop.f32.mrb[7].mxu0 }
 0x2b6   :  { %v400_v0 = vpack.c.bf16 %v399_v62, %v399_v62 }
 0x2b8   :  { %1214 = vmatmul.mubr.bf16.vlgmr.msra.gmra.mrb[4].mxu1 %v400_v0 }
 0x2b9   :  { %1253 = vmatprep.mubr.msk.bf16.mxu1 %vm1414_vm0, %v1413_v1  ;;  %1238 = vmatpush3.bf16.msra.mxu1 %v1341_v3 }
 0x2ba   :  { %1239 = vmatprep.subr.bf16.mxu1 %v1413_v1 }
 0x2bd   :  { %1240 = vmatpush3.bf16.msra.mxu1 %v1342_v4 }
 0x2be   :  { %1241 = vmatprep.subr.bf16.mxu1 %v1413_v1 }
 0x2c1   :  { %1242 = vmatpush3.bf16.msra.mxu1 %v1343_v5 }
 0x2c2   :  { %1243 = vmatprep.subr.bf16.mxu1 %v1413_v1 }
 0x2c5   :  { %1244 = vmatpush3.bf16.msra.mxu1 %v1344_v6 }
 0x2c6   :  { %1245 = vmatprep.subr.bf16.mxu1 %v1413_v1 }
 0x2c9   :  { %1246 = vmatpush3.bf16.msra.mxu1 %v1345_v7 }
 0x2ca   :  { %1247 = vmatprep.subr.bf16.mxu1 %v1413_v1 }
 0x2cd   :  { %1248 = vmatpush3.bf16.msra.mxu1 %v1346_v8 }
 0x2ce   :  { %1249 = vmatprep.subr.bf16.mxu1 %v1413_v1 }
 0x2d1   :  { %1250 = vmatpush3.bf16.msra.mxu1 %v1347_v16 }
 0x2d2   :  { %1251 = vmatprep.subr.bf16.mxu1 %v1413_v1 }
 0x2d5   :  { %1252 = vmatpush3.bf16.msra.mxu1 %v1348_v17 }
 0x2d6   :  { %1277 = vmatprep.subr.bf16.mxu1 %v1413_v1 }
 0x38b   :  { %v506_v10 = vpop.f32.mrb[4].mxu1 }
 0x38c   :  { %v507_v11 = vadd.f32 %v1020_v9, %v506_v10  ;;  %v1215_v12 = vpop.f32.mrb[5].mxu1 }
 0x38d   :  { %v509_v13 = vpop.f32.mrb[6].mxu1 }
 0x38e   :  { %v513_v14 = vpack.c.bf16 %v507_v11, %v507_v11  ;;  %512 = vst [vmem:[#allocation2] sm:$0xff] %v507_v11  ;;  %v1216_v15 = vpop.f32.mrb[7].mxu1 }
 0x390   :  { %1234 = vmatmul.mubr.bf16.vlgmr.msra.gmra.mrb[8].mxu0 %v513_v14 }
 0x391   :  { %1273 = vmatprep.mubr.msk.bf16.mxu0 %vm1414_vm0, %v1413_v1  ;;  %1258 = vmatpush3.bf16.msra.mxu0 %v1349_v18 }
 0x392   :  { %1259 = vmatprep.subr.bf16.mxu0 %v1413_v1 }
 0x395   :  { %1260 = vmatpush3.bf16.msra.mxu0 %v1350_v19 }
 0x396   :  { %1261 = vmatprep.subr.bf16.mxu0 %v1413_v1 }
 0x399   :  { %1262 = vmatpush3.bf16.msra.mxu0 %v1351_v20 }
 0x39a   :  { %1263 = vmatprep.subr.bf16.mxu0 %v1413_v1 }
 0x39d   :  { %1264 = vmatpush3.bf16.msra.mxu0 %v1352_v21 }
 0x39e   :  { %1265 = vmatprep.subr.bf16.mxu0 %v1413_v1 }
 0x3a1   :  { %1266 = vmatpush3.bf16.msra.mxu0 %v1353_v22 }
 0x3a2   :  { %1267 = vmatprep.subr.bf16.mxu0 %v1413_v1 }
 0x3a5   :  { %1268 = vmatpush3.bf16.msra.mxu0 %v1354_v23 }
 0x3a6   :  { %1269 = vmatprep.subr.bf16.mxu0 %v1413_v1 }
 0x3a9   :  { %1270 = vmatpush3.bf16.msra.mxu0 %v1355_v32 }
 0x3aa   :  { %1271 = vmatprep.subr.bf16.mxu0 %v1413_v1 }
 0x3ad   :  { %1272 = vmatpush3.bf16.msra.mxu0 %v1356_v33 }
 0x463   :  { %v619_v25 = vpop.f32.mrb[8].mxu0 }
 0x464   :  { %v620_v26 = vadd.f32 %v1029_v24, %v619_v25  ;;  %v1235_v27 = vpop.f32.mrb[9].mxu0 }
 0x465   :  { %v622_v28 = vpop.f32.mrb[10].mxu0 }
 0x466   :  { %v625_v29 = vmax.f32 %v620_v26, 0.0  ;;  %v1236_v30 = vpop.f32.mrb[11].mxu0 }
 0x468   :  { %v626_v31 = vpack.c.bf16 %v625_v29, %v625_v29 }
 0x46a   :  { %1254 = vmatmul.mubr.bf16.vlgmr.msra.gmra.mrb[8].mxu1 %v626_v31 }
 0x46b   :  { %1293 = vmatprep.mubr.msk.bf16.mxu1 %vm1414_vm0, %v1413_v1  ;;  %1278 = vmatpush3.bf16.msra.mxu1 %v1357_v34 }
 0x46c   :  { %1279 = vmatprep.subr.bf16.mxu1 %v1413_v1 }
 0x46f   :  { %1280 = vmatpush3.bf16.msra.mxu1 %v1358_v35 }
 0x470   :  { %1281 = vmatprep.subr.bf16.mxu1 %v1413_v1 }
 0x473   :  { %1282 = vmatpush3.bf16.msra.mxu1 %v1359_v36 }
 0x474   :  { %1283 = vmatprep.subr.bf16.mxu1 %v1413_v1 }
 0x477   :  { %1284 = vmatpush3.bf16.msra.mxu1 %v1360_v37 }
 0x478   :  { %1285 = vmatprep.subr.bf16.mxu1 %v1413_v1 }
 0x47b   :  { %1286 = vmatpush3.bf16.msra.mxu1 %v1361_v38 }
 0x47c   :  { %1287 = vmatprep.subr.bf16.mxu1 %v1413_v1 }
 0x47f   :  { %1288 = vmatpush3.bf16.msra.mxu1 %v1362_v39 }
 0x480   :  { %1289 = vmatprep.subr.bf16.mxu1 %v1413_v1 }
 0x483   :  { %1290 = vmatpush3.bf16.msra.mxu1 %v1363_v48 }
 0x484   :  { %1291 = vmatprep.subr.bf16.mxu1 %v1413_v1 }
 0x487   :  { %1292 = vmatpush3.bf16.msra.mxu1 %v1364_v49 }
 0x53d   :  { %v732_v41 = vpop.f32.mrb[8].mxu1 }
 0x53e   :  { %v733_v42 = vadd.f32 %v1038_v40, %v732_v41  ;;  %v1255_v43 = vpop.f32.mrb[9].mxu1 }
 0x53f   :  { %v735_v44 = vpop.f32.mrb[10].mxu1 }
 0x540   :  { %v738_v45 = vmax.f32 %v733_v42, 0.0  ;;  %v1256_v46 = vpop.f32.mrb[11].mxu1 }
 0x542   :  { %v739_v47 = vpack.c.bf16 %v738_v45, %v738_v45 }
 0x544   :  { %1274 = vmatmul.mubr.bf16.vlgmr.msra.gmra.mrb[12].mxu0 %v739_v47 }
 0x617   :  { %v845_v51 = vpop.f32.mrb[12].mxu0 }
 0x618   :  { %v846_v52 = vadd.f32 %v1047_v50, %v845_v51  ;;  %v1275_v53 = vpop.f32.mrb[13].mxu0 }
 0x619   :  { %v848_v54 = vpop.f32.mrb[14].mxu0 }
 0x61a   :  { %v851_v55 = vmax.f32 %v846_v52, 0.0  ;;  %v1276_v56 = vpop.f32.mrb[15].mxu0 }
 0x61c   :  { %v852_v57 = vpack.c.bf16 %v851_v55, %v851_v55 }
 0x61e   :  { %1294 = vmatmul.mubr.bf16.vlgmr.msra.gmra.mrb[12].mxu1 %v852_v57 }
 0x61f   :  { %1376 = shalt.err (!%p1373_p4)
}
 0x620   :  { %s1377_s3 = scalar_lea.hbm %s1852_s17, 128 }
 0x621   :  { %p1378_p5 = scmp.ne.s32.totalorder %s1852_s17, %s1377_s3  ;;  %p1381_p6 = scmp.lt.u32.totalorder %s1377_s3, %s1852_s17 }
 0x623   :  { %p1383_p7 = pnand %p1381_p6, %p1378_p5 }
 0x625   :  { %1386 = shalt.err (!%p1383_p7)
}
 0x626   :  { %974 = dma.vmem_to_hbm [thread:$0]  %s972_s28, 128, %s1852_s17, [#allocation3]   ;;  %v1056_v1 = vld [vmem:[%s1851_s16] ss:$0 sm:$0xff] }
 0x627   :  { %s1416_s7 = smov [#allocation4]  }
 0x628   :  { %s981_s21 = sshll.u32 %s1416_s7, 4  ;;  %s982_s21 = int_to_ptr.vmem [resolvable:$true] %s981_s21 }
 0x629   :  { %s1387_s2 = scalar_lea.vmem %s982_s21, 128  ;;  %p1392_p9 = scmp.lt.s32.totalorder %s982_s21, %s982_s21 }
 0x62a   :  { %p1388_p8 = scmp.ne.s32.totalorder %s982_s21, %s1387_s2  ;;  %p1393_p10 = scmp.lt.s32.totalorder %s1387_s2, %s1387_s2 }
 0x62c   :  { %p1394_p11 = por %p1393_p10, %p1392_p9 }
 0x62e   :  { %p1395_p12 = pnand %p1394_p11, %p1388_p8 }
 0x6f1   :  { %v958_v58 = vpop.f32.mrb[12].mxu1 }
 0x6f2   :  { %v959_v59 = vadd.f32 %v1056_v1, %v958_v58  ;;  %v1295_v60 = vpop.f32.mrb[13].mxu1 }
 0x6f3   :  { %v961_v61 = vpop.f32.mrb[14].mxu1 }
 0x6f4   :  { %964 = vst [vmem:[#allocation4] sm:$0xff] %v959_v59  ;;  %v1296_v62 = vpop.f32.mrb[15].mxu1 }
 0x6f5   :  { %1398 = shalt.err (!%p1395_p12)
}
 0x6f6   :  { %s1399_s16 = scalar_lea.hbm %s1853_s18, 128 }
 0x6f7   :  { %p1400_p13 = scmp.ne.s32.totalorder %s1853_s18, %s1399_s16  ;;  %p1403_p0 = scmp.lt.u32.totalorder %s1399_s16, %s1853_s18 }
 0x6f9   :  { %p1405_p1 = pnand %p1403_p0, %p1400_p13 }
 0x6fb   :  { %1408 = shalt.err (!%p1405_p1)
}
 0x6fc   :  { %984 = dma.vmem_to_hbm [thread:$0]  %s982_s21, 128, %s1853_s18, [#allocation5]  }
 0x6fd   :  { %1409 = dma.done.wait [#allocation3], 128  }
 0x6fe   :  { %1410 = vsyncadd [#allocation3], 4294967168 }
 0x6ff   :  { %1411 = dma.done.wait [#allocation5], 128  }
 0x700   :  { %1412 = vsyncadd [#allocation5], 4294967168 }
 0x701   :  { %991 = vsyncpa [#allocation3], 1 }
 0x702   :  { %992 = vsyncpa [#allocation5], 1 }

</bundles_post_ra>
